<compile_context>
chip_gen: v5e
topology: v5e:2x2
jax: 0.10.0
libtpu: 0.0.40
codegen_flags: <defaults>
</compile_context>

<pallas_src>
import jax
import jax.numpy as jnp
from jax.experimental import pallas as pl
from jax.experimental.pallas import tpu as pltpu

_LANE = 128


def _pick_tile_rows(rows, target=256):
    """Largest multiple-of-8 divisor of `rows` that is <= target (and <= rows/2
    when rows >= 16, so v7x's two TensorCores both get work)."""
    if rows % 8 != 0 or rows <= 8:
        return rows                      # tiny / irregular: single full block
    cap = min(target, max(8, rows // 2))
    cap -= cap % 8
    cap = max(cap, 8)
    for t in range(cap, 7, -8):
        if rows % t == 0:
            return t
    return rows


def _sq_dist_rows(gt_ref, pred_ref, sel_ref, mask_ref):
    # gt_ref / pred_ref : (TR, 512)  lane-dense rows of interleaved box coords
    # sel_ref           : (512, 128) constant group-of-4 sum selector
    # mask_ref          : (TR, 1)    per-row f32 {0,1} validity (per-image flag)
    d = gt_ref[...].astype(jnp.float32) - pred_ref[...].astype(jnp.float32)
    sq = d * d                                                   # dense VPU
    loss = jnp.dot(sq, sel_ref[...], preferred_element_type=jnp.float32)  # (TR,128)
    return loss * mask_ref[...]


def _origin_loss_kernel(gt_ref, pred_ref, sel_ref, mask_ref, out_ref):
    out_ref[...] = _sq_dist_rows(gt_ref, pred_ref, sel_ref, mask_ref)


def _origin_loss_acc_kernel(gt_ref, pred_ref, sel_ref, mask_ref, prev_ref, out_ref):
    # prev_ref is aliased with out_ref (input_output_aliases) -> in-place add.
    out_ref[...] = prev_ref[...] + _sq_dist_rows(gt_ref, pred_ref, sel_ref, mask_ref)


def box_projection_origin_loss(original_gt_boxes, pred_boxes, original_gt_mask,
                               prev_origin_loss=None, *, target_rows=256):
    """Per-(image, proposal) origin loss, shape (B, N), float32.

    original_gt_boxes : (B, N, 4) gathered noised-GT boxes (zeros where masked)
    pred_boxes        : (B, N, 4) predicted boxes
    original_gt_mask  : (B,) per-image "has original_gt" flag (module semantics)
    prev_origin_loss  : optional running loss, accumulated in-kernel
                        (matches `loss_dict['origin_loss'] += lo`).  Pass it as
                        (B, N_pad) float32 (N padded to a multiple of 128) to get
                        a true in-place aliased update.
    """
    B, N, C = pred_boxes.shape
    assert C == 4

    m = -(-N // _LANE)               # output rows (of 128 proposals) per image
    n_pad = m * _LANE
    pad_cols = (n_pad - N) * 4
    rows = B * m                     # total flattened output rows
    tr = _pick_tile_rows(rows, target_rows)
    grid = (rows // tr,)

    def to_rows(x):
        x = x.reshape(B, N * 4)                       # free contiguous collapse
        if pad_cols:
            # TODO(synk): have the producer allocate proposals padded to a
            # multiple of 128 so this pad (one extra pass) disappears.
            x = jnp.pad(x, ((0, 0), (0, pad_cols)))
        return x.reshape(rows, 4 * _LANE)             # free split: (R, 512)

    gt = to_rows(original_gt_boxes)                   # native dtype, no transpose
    pred = to_rows(pred_boxes)

    # Per-image flag -> per-row {0,1} f32 (tiny).
    mask = jnp.asarray(original_gt_mask)
    if mask.ndim > 1:
        mask = mask[:, 0]            # module only ever emits a per-image flag
    row_mask = jnp.repeat(mask.astype(jnp.float32), m).reshape(rows, 1)

    # Constant group-of-4 sum selector: sel[j, n] = 1 iff j // 4 == n.
    sel = jnp.repeat(jnp.eye(_LANE, dtype=jnp.float32), 4, axis=0)   # (512, 128)

    box_spec = pl.BlockSpec((tr, 4 * _LANE), lambda i: (i, 0))
    sel_spec = pl.BlockSpec((4 * _LANE, _LANE), lambda i: (0, 0))
    mask_spec = pl.BlockSpec((tr, 1), lambda i: (i, 0))
    out_spec = pl.BlockSpec((tr, _LANE), lambda i: (i, 0))
    cparams = pltpu.CompilerParams(dimension_semantics=("parallel",))
    out_shape = jax.ShapeDtypeStruct((rows, _LANE), jnp.float32)

    if prev_origin_loss is None:
        loss_rows = pl.pallas_call(
            _origin_loss_kernel,
            out_shape=out_shape,
            grid=grid,
            in_specs=[box_spec, box_spec, sel_spec, mask_spec],
            out_specs=out_spec,
            compiler_params=cparams,
        )(gt, pred, sel, row_mask)
    else:
        prev = jnp.asarray(prev_origin_loss)
        if prev.shape == (B, n_pad) and prev.dtype == jnp.float32:
            prev_rows = prev.reshape(rows, _LANE)     # free; true in-place alias
        else:
            # TODO(synk): keep the running 'origin_loss' buffer padded/f32 across
            # calls so this cast+pad (one accumulator-sized pass) is not needed.
            prev = prev.astype(jnp.float32)
            if prev.shape[1] != n_pad:
                prev = jnp.pad(prev, ((0, 0), (0, n_pad - prev.shape[1])))
            prev_rows = prev.reshape(rows, _LANE)
        loss_rows = pl.pallas_call(
            _origin_loss_acc_kernel,
            out_shape=out_shape,
            grid=grid,
            in_specs=[box_spec, box_spec, sel_spec, mask_spec, out_spec],
            out_specs=out_spec,
            input_output_aliases={4: 0},
            compiler_params=cparams,
        )(gt, pred, sel, row_mask, prev_rows)

    loss = loss_rows.reshape(B, n_pad)                # free split/merge reshape
    if n_pad != N:
        # TODO(synk): avoid this output-sized slice by keeping the loss buffer
        # padded to a multiple of 128 across calls.
        loss = loss[:, :N]
    return loss


if __name__ == "__main__":
    key = jax.random.PRNGKey(0)
    B, N, G = 2, 8, 5  # batch, proposals per image, gt boxes per image
    k_pred, k_gt = jax.random.split(key, 2)

    # Predicted boxes for every image: (B, N, 4)
    pred_boxes = jax.random.uniform(k_pred, (B, N, 4), dtype=jnp.float32) * 32.0

    # --- glue: emulate the batched_inputs dict handling (plain JAX / host side) ---
    # TODO(synk): the per-image dict iteration / Instances.gt_boxes gather and the
    # loss_dict mutation are Python glue with no Pallas equivalent; done here in JAX.
    gt_boxes_0 = jax.random.uniform(k_gt, (G, 4), dtype=jnp.float32) * 32.0
    original_gt_0 = jnp.array([0, 1, 2, 3, 4, 0, 1, 2], dtype=jnp.int32)   # (N,)
    gathered_0 = jnp.take(gt_boxes_0, original_gt_0, axis=0)               # has 'original_gt'
    gathered_1 = jnp.zeros((N, 4), jnp.float32)                            # no 'original_gt'

    original_gt_boxes = jnp.stack([gathered_0, gathered_1])   # (B, N, 4)
    original_gt_mask = jnp.array([1, 0], dtype=jnp.int32)     # per-image (B,)
    # -------------------------------------------------------------------------------

    loss = box_projection_origin_loss(original_gt_boxes, pred_boxes, original_gt_mask)
    loss = jax.block_until_ready(loss)

    # mirrors `assert torch.isfinite(lo).all()`
    assert bool(jnp.isfinite(loss).all())

    # reference check (pure JAX)
    ref = jnp.sum((original_gt_boxes - pred_boxes) ** 2, axis=-1)
    ref = jnp.where(original_gt_mask[:, None] != 0, ref, jnp.zeros_like(ref))
    assert jnp.allclose(loss, ref, rtol=1e-5, atol=1e-5)

    # accumulation path ('origin_loss' already present in loss_dict), fused in-kernel
    loss2 = jax.block_until_ready(
        box_projection_origin_loss(original_gt_boxes, pred_boxes, original_gt_mask,
                                   prev_origin_loss=loss))
    assert jnp.allclose(loss2, 2.0 * ref, rtol=1e-5, atol=1e-5)

    print("KERNEL_OK")
</pallas_src>

<mosaic_0001>
module attributes {stable_mosaic.version = 11 : i64} {
  func.func @_origin_loss_kernel(%arg0: i32, %arg1: memref<2x512xf32, #tpu.memory_space<vmem>>, %arg2: memref<2x512xf32, #tpu.memory_space<vmem>>, %arg3: memref<512x128xf32, #tpu.memory_space<vmem>>, %arg4: memref<2x1xf32, #tpu.memory_space<vmem>>, %arg5: memref<2x128xf32, #tpu.memory_space<vmem>>) attributes {dimension_semantics = [#tpu.dimension_semantics<parallel>], iteration_bounds = array<i64: 1>, scalar_prefetch = 0 : i64, scratch_operands = 0 : i64, tpu.core_type = #tpu.core_type<tc>, window_params = [{transform_indices = @transform_0, window_bounds = array<i64: 2, 512>}, {transform_indices = @transform_1, window_bounds = array<i64: 2, 512>}, {pipeline_mode = #tpu.pipeline_mode<synchronous>, transform_indices = @transform_2, window_bounds = array<i64: 512, 128>}, {transform_indices = @transform_3, window_bounds = array<i64: 2, 1>}, {transform_indices = @transform_4, window_bounds = array<i64: 2, 128>}]} {
    %c0 = arith.constant 0 : index
    %c0_0 = arith.constant 0 : index
    %0 = vector.load %arg1[%c0, %c0_0] : memref<2x512xf32, #tpu.memory_space<vmem>>, vector<2x512xf32>
    %c0_1 = arith.constant 0 : index
    %c0_2 = arith.constant 0 : index
    %1 = vector.load %arg2[%c0_1, %c0_2] : memref<2x512xf32, #tpu.memory_space<vmem>>, vector<2x512xf32>
    %2 = arith.subf %0, %1 : vector<2x512xf32>
    %3 = arith.mulf %2, %2 : vector<2x512xf32>
    %c0_3 = arith.constant 0 : index
    %c0_4 = arith.constant 0 : index
    %4 = vector.load %arg3[%c0_3, %c0_4] : memref<512x128xf32, #tpu.memory_space<vmem>>, vector<512x128xf32>
    %cst = arith.constant dense<0.000000e+00> : vector<2x128xf32>
    %5 = tpu.matmul %3, %4, %cst {dimension_numbers = #tpu.dot_dimension_numbers<[1], [0], [0], [1], [0, 0, 1, 1], [], []>} : vector<2x512xf32>, vector<512x128xf32>, vector<2x128xf32> -> vector<2x128xf32>
    %c0_5 = arith.constant 0 : index
    %c0_6 = arith.constant 0 : index
    %6 = vector.load %arg4[%c0_5, %c0_6] : memref<2x1xf32, #tpu.memory_space<vmem>>, vector<2x1xf32>
    %7 = vector.broadcast %6 : vector<2x1xf32> to vector<2x128xf32>
    %8 = arith.mulf %5, %7 : vector<2x128xf32>
    %c0_7 = arith.constant 0 : index
    %c0_8 = arith.constant 0 : index
    %9 = vector.load %arg5[%c0_7, %c0_8] : memref<2x128xf32, #tpu.memory_space<vmem>>, vector<2x128xf32>
    tpu.vector_store %arg5[%c0_7, %c0_8], %8 {strides = array<i32>} : memref<2x128xf32, #tpu.memory_space<vmem>>, vector<2x128xf32>,
    return
  }
  func.func @transform_0(%arg0: i32) -> (i32, i32) {
    %c0_i32 = arith.constant 0 : i32
    %c0_i32_0 = arith.constant 0 : i32
    return %arg0, %c0_i32 : i32, i32
  }
  func.func @transform_1(%arg0: i32) -> (i32, i32) {
    %c0_i32 = arith.constant 0 : i32
    %c0_i32_0 = arith.constant 0 : i32
    return %arg0, %c0_i32 : i32, i32
  }
  func.func @transform_2(%arg0: i32) -> (i32, i32) {
    %c0_i32 = arith.constant 0 : i32
    %c0_i32_0 = arith.constant 0 : i32
    %c0_i32_1 = arith.constant 0 : i32
    return %c0_i32, %c0_i32_0 : i32, i32
  }
  func.func @transform_3(%arg0: i32) -> (i32, i32) {
    %c0_i32 = arith.constant 0 : i32
    %c0_i32_0 = arith.constant 0 : i32
    return %arg0, %c0_i32 : i32, i32
  }
  func.func @transform_4(%arg0: i32) -> (i32, i32) {
    %c0_i32 = arith.constant 0 : i32
    %c0_i32_0 = arith.constant 0 : i32
    return %arg0, %c0_i32 : i32, i32
  }
}

</mosaic_0001>

<bundles_post_ra>
// kernel: tpu_custom_call.1
= control target key start
LH: loop header
LB: loop body
LE: loop exit
PB: predicated region body
PF: predicated region fallthrough
CT: control target
= control target key end

     0   :  { %9 = vsyncpa [#allocation3], 0  ;;  %s402_s0 = inlined_call_operand.hbm [shape: f32[2,512], index: 0, kind: input, shape index: {}]   ;;  %s403_s1 = inlined_call_operand.hbm [shape: f32[2,512], index: 1, kind: input, shape index: {}]   ;;  %s404_s2 = inlined_call_operand.hbm [shape: f32[512,128], index: 2, kind: input, shape index: {}]   ;;  %s405_s3 = inlined_call_operand.vmem [shape: f32[2,1], index: 3, kind: input, shape index: {}]   ;;  %s406_s4 = inlined_call_operand.hbm [shape: f32[2,128], index: 4, kind: output, shape index: {}]  }
   0x1   :  { %10 = vsyncpa [#allocation6], 0  ;;  %s28_s17 = sshll.u32 %s403_s1, 4  ;;  %s29_s17 = int_to_ptr.hbm [resolvable:$true] %s28_s17 }
   0x2   :  { %11 = vsyncpa [#allocation4], 0  ;;  %s355_s18 = smov [#allocation5]   ;;  %s17_s22 = sshll.u32 %s402_s0, 4  ;;  %s18_s22 = int_to_ptr.hbm [resolvable:$true] %s17_s22 }
   0x3   :  { %s30_s19 = sshll.u32 %s355_s18, 4  ;;  %s356_s23 = smov [#allocation2]   ;;  %s31_s19 = int_to_ptr.vmem [resolvable:$true] %s30_s19 }
   0x4   :  { %33 = dma.hbm_to_vmem [thread:$0]  %s29_s17, 128, %s31_s19, [#allocation6]  }
   0x5   :  { %s19_s24 = sshll.u32 %s356_s23, 4  ;;  %s38_s27 = sshll.u32 %s404_s2, 4  ;;  %s20_s24 = int_to_ptr.vmem [resolvable:$true] %s19_s24  ;;  %s39_s27 = int_to_ptr.hbm [resolvable:$true] %s38_s27 }
   0x6   :  { %22 = dma.hbm_to_vmem [thread:$0]  %s18_s22, 128, %s20_s24, [#allocation3]  }
   0x7   :  { %s357_s1 = smov [#allocation7]   ;;  %s358_s29 = smov 128  }
   0x8   :  { %s40_s28 = sshll.u32 %s357_s1, 4  ;;  %s359_s30 = smov 8   ;;  %s41_s28 = int_to_ptr.vmem [resolvable:$true] %s40_s28 }
   0x9   :  { %46 = dma.hbm_to_vmem [thread:$0]  %s39_s27, 8192, %s41_s28, [#allocation6], %s358_s29, %s358_s29, %s359_s30  }
   0xa   :  { %349 = dma.done.wait [#allocation3], 128  }
   0xb   :  { %350 = vsyncadd [#allocation3], 4294967168 }
   0xc   :  { %351 = dma.done.wait [#allocation6], 8320  }
   0xd   :  { %352 = vsyncadd [#allocation6], 4294958976  ;;  %v112_v0 = vld [vmem:[#allocation7 + $0x178] sm:$0xff]  ;;  %v111_v1 = vld [vmem:[#allocation7 + $0x170] sm:$0xff]  ;;  %s234_s8 = sshll.u32 %s406_s4, 4  ;;  %s235_s8 = int_to_ptr.hbm [resolvable:$true] %s234_s8 }
   0xe   :  { %v128_v2 = vld [vmem:[#allocation7 + $0x1f8] sm:$0xff]  ;;  %179 = vmatpush.msra.mxu2 %v112_v0  ;;  %v110_v5 = vld [vmem:[#allocation7 + $0x168] sm:$0xff]  ;;  %v127_v6 = vld [vmem:[#allocation7 + $0x1f0] sm:$0xff] }
   0xf   :  { %199 = vmatpush.msra.mxu3 %v128_v2  ;;  %v80_v3 = vld [vmem:[#allocation7 + $0x78] sm:$0xff]  ;;  %v79_v7 = vld [vmem:[#allocation7 + $0x70] sm:$0xff]  ;;  %v126_v9 = vld [vmem:[#allocation7 + $0x1e8] sm:$0xff] }
  0x10   :  { %v96_v4 = vld [vmem:[#allocation7 + $0xf8] sm:$0xff]  ;;  %139 = vmatpush.msra.mxu0 %v80_v3  ;;  %v95_v8 = vld [vmem:[#allocation7 + $0xf0] sm:$0xff]  ;;  %180 = vmatpush.msra.mxu2 %v111_v1  ;;  %v78_v10 = vld [vmem:[#allocation7 + $0x68] sm:$0xff] }
  0x11   :  { %159 = vmatpush.msra.mxu1 %v96_v4  ;;  %200 = vmatpush.msra.mxu3 %v127_v6  ;;  %v109_v11 = vld [vmem:[#allocation7 + $0x160] sm:$0xff]  ;;  %v94_v12 = vld [vmem:[#allocation7 + $0xe8] sm:$0xff]  ;;  %v108_v16 = vld [vmem:[#allocation7 + $0x158] sm:$0xff] }
  0x12   :  { %140 = vmatpush.msra.mxu0 %v79_v7  ;;  %v125_v13 = vld [vmem:[#allocation7 + $0x1e0] sm:$0xff]  ;;  %181 = vmatpush.msra.mxu2 %v110_v5  ;;  %v124_v17 = vld [vmem:[#allocation7 + $0x1d8] sm:$0xff]  ;;  %v107_v20 = vld [vmem:[#allocation7 + $0x150] sm:$0xff] }
  0x13   :  { %160 = vmatpush.msra.mxu1 %v95_v8  ;;  %201 = vmatpush.msra.mxu3 %v126_v9  ;;  %v77_v14 = vld [vmem:[#allocation7 + $0x60] sm:$0xff]  ;;  %v76_v18 = vld [vmem:[#allocation7 + $0x58] sm:$0xff]  ;;  %v123_v21 = vld [vmem:[#allocation7 + $0x1d0] sm:$0xff]  ;;  %v360_v9 = vmov 0  }
  0x14   :  { %v93_v15 = vld [vmem:[#allocation7 + $0xe0] sm:$0xff]  ;;  %141 = vmatpush.msra.mxu0 %v78_v10  ;;  %182 = vmatpush.msra.mxu2 %v109_v11  ;;  %v92_v19 = vld [vmem:[#allocation7 + $0xd8] sm:$0xff]  ;;  %v75_v22 = vld [vmem:[#allocation7 + $0x50] sm:$0xff] }
  0x15   :  { %161 = vmatpush.msra.mxu1 %v94_v12  ;;  %202 = vmatpush.msra.mxu3 %v125_v13  ;;  %v91_v23 = vld [vmem:[#allocation7 + $0xd0] sm:$0xff]  ;;  %v106_v24 = vld [vmem:[#allocation7 + $0x148] sm:$0xff]  ;;  %v105_v28 = vld [vmem:[#allocation7 + $0x140] sm:$0xff] }
  0x16   :  { %142 = vmatpush.msra.mxu0 %v77_v14  ;;  %183 = vmatpush.msra.mxu2 %v108_v16  ;;  %v122_v25 = vld [vmem:[#allocation7 + $0x1c8] sm:$0xff]  ;;  %v121_v29 = vld [vmem:[#allocation7 + $0x1c0] sm:$0xff]  ;;  %v104_v32 = vld [vmem:[#allocation7 + $0x138] sm:$0xff] }
  0x17   :  { %162 = vmatpush.msra.mxu1 %v93_v15  ;;  %203 = vmatpush.msra.mxu3 %v124_v17  ;;  %v74_v26 = vld [vmem:[#allocation7 + $0x48] sm:$0xff]  ;;  %v73_v30 = vld [vmem:[#allocation7 + $0x40] sm:$0xff]  ;;  %v120_v33 = vld [vmem:[#allocation7 + $0x1b8] sm:$0xff] }
  0x18   :  { %143 = vmatpush.msra.mxu0 %v76_v18  ;;  %184 = vmatpush.msra.mxu2 %v107_v20  ;;  %v90_v27 = vld [vmem:[#allocation7 + $0xc8] sm:$0xff]  ;;  %v89_v31 = vld [vmem:[#allocation7 + $0xc0] sm:$0xff]  ;;  %v72_v34 = vld [vmem:[#allocation7 + $0x38] sm:$0xff] }
  0x19   :  { %163 = vmatpush.msra.mxu1 %v92_v19  ;;  %204 = vmatpush.msra.mxu3 %v123_v21  ;;  %v88_v35 = vld [vmem:[#allocation7 + $0xb8] sm:$0xff]  ;;  %v103_v36 = vld [vmem:[#allocation7 + $0x130] sm:$0xff]  ;;  %v102_v40 = vld [vmem:[#allocation7 + $0x128] sm:$0xff] }
  0x1a   :  { %144 = vmatpush.msra.mxu0 %v75_v22  ;;  %185 = vmatpush.msra.mxu2 %v106_v24  ;;  %v119_v37 = vld [vmem:[#allocation7 + $0x1b0] sm:$0xff]  ;;  %v118_v41 = vld [vmem:[#allocation7 + $0x1a8] sm:$0xff]  ;;  %v101_v45 = vld [vmem:[#allocation7 + $0x120] sm:$0xff] }
  0x1b   :  { %164 = vmatpush.msra.mxu1 %v91_v23  ;;  %205 = vmatpush.msra.mxu3 %v122_v25  ;;  %v71_v38 = vld [vmem:[#allocation7 + $0x30] sm:$0xff]  ;;  %v70_v42 = vld [vmem:[#allocation7 + $0x28] sm:$0xff]  ;;  %v117_v46 = vld [vmem:[#allocation7 + $0x1a0] sm:$0xff] }
  0x1c   :  { %145 = vmatpush.msra.mxu0 %v74_v26  ;;  %186 = vmatpush.msra.mxu2 %v105_v28  ;;  %v87_v39 = vld [vmem:[#allocation7 + $0xb0] sm:$0xff]  ;;  %v86_v43 = vld [vmem:[#allocation7 + $0xa8] sm:$0xff]  ;;  %v62_v47 = vld [vmem:[#allocation5] sm:$0xff] }
  0x1d   :  { %165 = vmatpush.msra.mxu1 %v90_v27  ;;  %206 = vmatpush.msra.mxu3 %v121_v29  ;;  %v61_v44 = vld [vmem:[#allocation2] sm:$0xff]  ;;  %v69_v48 = vld [vmem:[#allocation7 + $0x20] sm:$0xff]  ;;  %v100_v51 = vld [vmem:[#allocation7 + $0x118] sm:$0xff] }
  0x1e   :  { %146 = vmatpush.msra.mxu0 %v73_v30  ;;  %187 = vmatpush.msra.mxu2 %v104_v32  ;;  %v85_v49 = vld [vmem:[#allocation7 + $0xa0] sm:$0xff]  ;;  %v63_v50 = vsub.f32 %v61_v44, %v62_v47  ;;  %v116_v52 = vld [vmem:[#allocation7 + $0x198] sm:$0xff]  ;;  %v99_v56 = vld [vmem:[#allocation7 + $0x110] sm:$0xff] }
  0x1f   :  { %166 = vmatpush.msra.mxu1 %v89_v31  ;;  %207 = vmatpush.msra.mxu3 %v120_v33  ;;  %v68_v53 = vld [vmem:[#allocation7 + $0x18] sm:$0xff]  ;;  %v115_v57 = vld [vmem:[#allocation7 + $0x190] sm:$0xff]  ;;  %v98_v60 = vld [vmem:[#allocation7 + $0x108] sm:$0xff] }
  0x20   :  { %147 = vmatpush.msra.mxu0 %v72_v34  ;;  %188 = vmatpush.msra.mxu2 %v103_v36  ;;  %v84_v54 = vld [vmem:[#allocation7 + $0x98] sm:$0xff]  ;;  %v64_v55 = vmul.f32 %v63_v50, %v63_v50  ;;  %v67_v58 = vld [vmem:[#allocation7 + $0x10] sm:$0xff]  ;;  %v114_v61 = vld [vmem:[#allocation7 + $0x188] sm:$0xff] }
  0x21   :  { %167 = vmatpush.msra.mxu1 %v88_v35  ;;  %208 = vmatpush.msra.mxu3 %v119_v37  ;;  %v83_v59 = vld [vmem:[#allocation7 + $0x90] sm:$0xff]  ;;  %v66_v62 = vld [vmem:[#allocation7 + $0x8] sm:$0xff]  ;;  %v97_v0 = vld [vmem:[#allocation7 + $0x100] sm:$0xff] }
  0x22   :  { %148 = vmatpush.msra.mxu0 %v71_v38  ;;  %189 = vmatpush.msra.mxu2 %v102_v40  ;;  %130 = vst [vmem:[#allocation1] ss:$4 sm:$0xff] %v64_v55  ;;  %v82_v63 = vld [vmem:[#allocation7 + $0x88] sm:$0xff]  ;;  %v113_v1 = vld [vmem:[#allocation7 + $0x180] sm:$0xff] }
  0x23   :  { %168 = vmatpush.msra.mxu1 %v87_v39  ;;  %209 = vmatpush.msra.mxu3 %v118_v41  ;;  %v65_v2 = vld [vmem:[#allocation7] sm:$0xff]  ;;  %v219_v4 = vld [vmem:[%s405_s3] sm:$0x3]  ;;  %s361_s3 = smov [#allocation8]  }
  0x24   :  { %149 = vmatpush.msra.mxu0 %v70_v42  ;;  %190 = vmatpush.msra.mxu2 %v101_v45  ;;  %v81_v3 = vld [vmem:[#allocation7 + $0x80] sm:$0xff]  ;;  %s232_s5 = sshll.u32 %s361_s3, 4  ;;  %s233_s5 = int_to_ptr.vmem [resolvable:$true] %s232_s5 }
  0x25   :  { %169 = vmatpush.msra.mxu1 %v86_v43  ;;  %210 = vmatpush.msra.mxu3 %v117_v46 }
  0x26   :  { %150 = vmatpush.msra.mxu0 %v69_v48  ;;  %191 = vmatpush.msra.mxu2 %v100_v51 }
  0x27   :  { %170 = vmatpush.msra.mxu1 %v85_v49  ;;  %211 = vmatpush.msra.mxu3 %v116_v52 }
  0x28   :  { %151 = vmatpush.msra.mxu0 %v68_v53  ;;  %192 = vmatpush.msra.mxu2 %v99_v56 }
  0x29   :  { %171 = vmatpush.msra.mxu1 %v84_v54  ;;  %212 = vmatpush.msra.mxu3 %v115_v57  ;;  %v133_v5 = vld.sshfl [vmem:[#allocation1 + $0x10] sm:$0xff pattern:$0x73625140]  ;;  %v134_v6 = vld.sshfl [vmem:[#allocation1 + $0x18] sm:$0xff pattern:$0x73625140] }
  0x2a   :  { %152 = vmatpush.msra.mxu0 %v67_v58  ;;  %193 = vmatpush.msra.mxu2 %v98_v60  ;;  %v131_v7 = vld.sshfl [vmem:[#allocation1] sm:$0xff pattern:$0x73625140]  ;;  %v132_v8 = vld.sshfl [vmem:[#allocation1 + $0x8] sm:$0xff pattern:$0x73625140] }
  0x2b   :  { %172 = vmatpush.msra.mxu1 %v83_v59  ;;  %213 = vmatpush.msra.mxu3 %v114_v61 }
  0x2c   :  { %153 = vmatpush.msra.mxu0 %v66_v62  ;;  %194 = vmatpush.msra.mxu2 %v97_v0 }
  0x2d   :  { %173 = vmatpush.msra.mxu1 %v82_v63  ;;  %214 = vmatpush.msra.mxu3 %v113_v1 }
  0x2e   :  { %154 = vmatpush.msra.mxu0 %v65_v2  ;;  %195 = vmatmul.f32.vlgmr.msra.gmra.mxu2 %v133_v5 }
  0x2f   :  { %174 = vmatpush.msra.mxu1 %v81_v3  ;;  %215 = vmatmul.f32.vlgmr.msra.gmra.mxu3 %v134_v6 }
  0x30   :  { %155 = vmatmul.f32.vlgmr.msra.gmra.mxu0 %v131_v7  ;;  %175 = vmatmul.f32.vlgmr.msra.gmra.mxu1 %v132_v8 }
  0x31   :  { %252 = vset.pattern.permute.xlu0 %v360_v9 }
  0x32   :  { %222 = vperm.xlu0 %252, %v219_v4  }
  0xa4   :  { %v223_v16 = vpop.permute.xlu0 %222 }
  0xad   :  { %v156_v10 = vpop.f32.mrf.mxu0  ;;  %v176_v11 = vpop.f32.mrf.mxu1 }
  0xae   :  { %v177_v12 = vadd.f32 %v176_v11, %v156_v10 }
  0xb1   :  { %v196_v13 = vpop.f32.mrf.mxu2 }
  0xb2   :  { %v216_v14 = vpop.f32.mrf.mxu3  ;;  %v197_v15 = vadd.f32 %v196_v13, %v177_v12 }
  0xb4   :  { %v217_v17 = vadd.f32 %v216_v14, %v197_v15 }
  0xb6   :  { %v225_v18 = vmul.f32 %v223_v16, %v217_v17 }
  0xb8   :  { %226 = vst [vmem:[#allocation8] sm:$0x3] %v225_v18 }
  0xb9   :  { %237 = dma.vmem_to_hbm [thread:$0]  %s233_s5, 32, %s235_s8, [#allocation4]  }
  0xba   :  { %353 = dma.done.wait [#allocation4], 32  }
  0xbb   :  { %354 = vsyncadd [#allocation4], 4294967264 }
  0xbc   :  { %242 = vsyncpa [#allocation3], 1 }
  0xbd   :  { %243 = vsyncpa [#allocation6], 1 }
  0xbe   :  { %244 = vsyncpa [#allocation4], 1 }

</bundles_post_ra>
